<compile_context>
chip_gen: v6e
topology: v6e:2x2x1
jax: 0.10.0
libtpu: 0.0.40
codegen_flags: <defaults>
</compile_context>

<pallas_src>
import jax
import jax.numpy as jnp
from jax.experimental import pallas as pl
from jax.experimental.pallas import tpu as pltpu

LANES = 128
SUBLANES = 8


def affine_sigmoid_kernel(coef_ref, x_ref, o_ref):
    # x_ref / o_ref: (2, TILE_R, 128) f32 — feature index on axis 0, batch
    # packed densely onto (sublane, lane).
    # coef_ref: (3,) f32 in SMEM = 0.5 * [c0, c1, c2], where
    #   d = c0*x0 + c1*x1 + c2  is the collapsed-network logit difference.
    x0 = x_ref[0]                               # (TILE_R, 128)
    x1 = x_ref[1]                               # (TILE_R, 128)
    half_d = coef_ref[0] * x0 + coef_ref[1] * x1 + coef_ref[2]
    # 2-class softmax == sigmoid(d) = 0.5*tanh(d/2) + 0.5 (tanh on the EUP
    # slot; no VALU divide, no cross-lane reduction).
    t = jnp.tanh(half_d)
    p0 = 0.5 * t + 0.5
    o_ref[0] = p0                               # softmax(y)[:, 0]
    o_ref[1] = 1.0 - p0                         # softmax(y)[:, 1]


def torch_with_softmax_forward(x, w1, b1, w2, b2, tile_r=None):
    """x: (B, 2) f32.  w1: (2, 5), b1: (5,), w2: (5, 2), b2: (2,).

    w1/w2 are stored (in, out), i.e. PyTorch's nn.Linear weight transposed.
    Returns softmax(Linear2(Linear1(x)), axis=1) with shape (B, 2).
    """
    B = x.shape[0]

    # Collapse the two Linears on the host (exact: no activation in between):
    #   y = x @ (w1 @ w2) + (b1 @ w2 + b2)
    W = w1 @ w2                                          # (2, 2)
    bb = b1 @ w2 + b2                                    # (2,)
    # Only the logit difference d = y0 - y1 is needed; fold the 0.5 of
    # sigmoid(d) = 0.5*tanh(d/2) + 0.5 into the coefficients.
    coef = (0.5 * jnp.stack([W[0, 0] - W[0, 1],
                             W[1, 0] - W[1, 1],
                             bb[0] - bb[1]])).astype(jnp.float32)   # (3,)

    # Sublane+lane-dense batch layout: (2, R, 128) with R a multiple of 8.
    r_needed = pl.cdiv(B, LANES)                 # 128-wide rows of batch
    if tile_r is None:
        # ~1 MiB per input buffer (tile_r = 1024), but keep >= 2 grid steps
        # once the batch is big enough so both v7x TensorCores get work;
        # always a multiple of 8 sublanes.
        tile_r = max(SUBLANES,
                     min(1024,
                         SUBLANES * pl.cdiv(pl.cdiv(r_needed, 2), SUBLANES)))
    n_steps = pl.cdiv(r_needed, tile_r)
    R = n_steps * tile_r
    b_pad = R * LANES

    # Feature-major + pad + fold batch onto (sublane, lane).  Kept under the
    # same jit as the kernel so XLA fuses these layout passes.
    x_t = jnp.transpose(x)                               # (2, B)
    if b_pad != B:
        x_t = jnp.pad(x_t, ((0, 0), (0, b_pad - B)))     # (2, b_pad)
    x_r = x_t.reshape(2, R, LANES)                       # (2, R, 128)

    smem = pl.BlockSpec(memory_space=pltpu.MemorySpace.SMEM)
    out_r = pl.pallas_call(
        affine_sigmoid_kernel,
        out_shape=jax.ShapeDtypeStruct((2, R, LANES), jnp.float32),
        grid=(n_steps,),
        in_specs=[
            smem,                                                 # coef (3,)
            pl.BlockSpec((2, tile_r, LANES), lambda i: (0, i, 0)),  # x tile
        ],
        out_specs=pl.BlockSpec((2, tile_r, LANES), lambda i: (0, i, 0)),
        compiler_params=pltpu.CompilerParams(
            dimension_semantics=("parallel",)),
    )(coef, x_r)

    # Back to the PyTorch-style (B, 2) layout (drop padded tail columns).
    return out_r.reshape(2, b_pad)[:, :B].T


def reference_forward(x, w1, b1, w2, b2):
    h = x @ w1 + b1
    y = h @ w2 + b2
    return jax.nn.softmax(y, axis=1)


if __name__ == "__main__":
    key = jax.random.PRNGKey(0)
    k_x, k_w1, k_b1, k_w2, k_b2 = jax.random.split(key, 5)

    B = 8  # batch size
    # Deterministic params (shapes from nn.Linear(2,5) / nn.Linear(5,2)),
    # stored as (in, out) — PyTorch weight transposed — for x @ W.
    x = jax.random.normal(k_x, (B, 2), dtype=jnp.float32)
    w1 = jax.random.normal(k_w1, (2, 5), dtype=jnp.float32) * 0.5
    b1 = jax.random.normal(k_b1, (5,), dtype=jnp.float32) * 0.1
    w2 = jax.random.normal(k_w2, (5, 2), dtype=jnp.float32) * 0.5
    b2 = jax.random.normal(k_b2, (2,), dtype=jnp.float32) * 0.1

    fwd = jax.jit(torch_with_softmax_forward)
    out = jax.block_until_ready(fwd(x, w1, b1, w2, b2))

    ref = reference_forward(x, w1, b1, w2, b2)
    assert out.shape == (B, 2)
    assert jnp.allclose(out, ref, atol=1e-5, rtol=1e-5), (out, ref)
    # Softmax rows sum to 1 (p1 = 1 - p0 by construction).
    assert jnp.allclose(jnp.sum(out, axis=1), jnp.ones((B,)), atol=1e-6)

    print("KERNEL_OK")
</pallas_src>

<mosaic_0001>
module attributes {stable_mosaic.version = 11 : i64} {
  func.func @affine_sigmoid_kernel(%arg0: i32, %arg1: memref<3xf32, #tpu.memory_space<smem>>, %arg2: memref<2x8x128xf32, #tpu.memory_space<vmem>>, %arg3: memref<2x8x128xf32, #tpu.memory_space<vmem>>) attributes {dimension_semantics = [#tpu.dimension_semantics<parallel>], iteration_bounds = array<i64: 1>, scalar_prefetch = 0 : i64, scratch_operands = 0 : i64, tpu.core_type = #tpu.core_type<tc>, window_params = [{transform_indices = @transform_0, window_bounds = array<i64: 3>}, {transform_indices = @transform_1, window_bounds = array<i64: 2, 8, 128>}, {transform_indices = @transform_2, window_bounds = array<i64: 2, 8, 128>}]} {
    %c0 = arith.constant 0 : index
    %c0_0 = arith.constant 0 : index
    %c0_1 = arith.constant 0 : index
    %0 = vector.load %arg2[%c0, %c0_0, %c0_1] : memref<2x8x128xf32, #tpu.memory_space<vmem>>, vector<1x8x128xf32>
    %1 = vector.shape_cast %0 : vector<1x8x128xf32> to vector<8x128xf32>
    %c1 = arith.constant 1 : index
    %c0_2 = arith.constant 0 : index
    %c0_3 = arith.constant 0 : index
    %2 = vector.load %arg2[%c1, %c0_2, %c0_3] : memref<2x8x128xf32, #tpu.memory_space<vmem>>, vector<1x8x128xf32>
    %3 = vector.shape_cast %2 : vector<1x8x128xf32> to vector<8x128xf32>
    %c0_4 = arith.constant 0 : index
    %4 = memref.load %arg1[%c0_4] : memref<3xf32, #tpu.memory_space<smem>>
    %5 = vector.broadcast %4 : f32 to vector<8x128xf32>
    %6 = arith.mulf %5, %1 : vector<8x128xf32>
    %c1_5 = arith.constant 1 : index
    %7 = memref.load %arg1[%c1_5] : memref<3xf32, #tpu.memory_space<smem>>
    %8 = vector.broadcast %7 : f32 to vector<8x128xf32>
    %9 = arith.mulf %8, %3 : vector<8x128xf32>
    %10 = arith.addf %6, %9 : vector<8x128xf32>
    %c2 = arith.constant 2 : index
    %11 = memref.load %arg1[%c2] : memref<3xf32, #tpu.memory_space<smem>>
    %12 = vector.broadcast %11 : f32 to vector<8x128xf32>
    %13 = arith.addf %10, %12 : vector<8x128xf32>
    %14 = math.tanh %13 : vector<8x128xf32>
    %cst = arith.constant 5.000000e-01 : f32
    %15 = vector.broadcast %cst : f32 to vector<8x128xf32>
    %16 = arith.mulf %15, %14 : vector<8x128xf32>
    %cst_6 = arith.constant 5.000000e-01 : f32
    %17 = vector.broadcast %cst_6 : f32 to vector<8x128xf32>
    %18 = arith.addf %16, %17 : vector<8x128xf32>
    %c0_7 = arith.constant 0 : index
    %c0_8 = arith.constant 0 : index
    %c0_9 = arith.constant 0 : index
    %19 = vector.load %arg3[%c0_7, %c0_8, %c0_9] : memref<2x8x128xf32, #tpu.memory_space<vmem>>, vector<1x8x128xf32>
    %20 = vector.shape_cast %19 : vector<1x8x128xf32> to vector<8x128xf32>
    %21 = vector.shape_cast %18 : vector<8x128xf32> to vector<1x8x128xf32>
    tpu.vector_store %arg3[%c0_7, %c0_8, %c0_9], %21 {strides = array<i32>} : memref<2x8x128xf32, #tpu.memory_space<vmem>>, vector<1x8x128xf32>,
    %cst_10 = arith.constant 1.000000e+00 : f32
    %22 = vector.broadcast %cst_10 : f32 to vector<8x128xf32>
    %23 = arith.subf %22, %18 : vector<8x128xf32>
    %c1_11 = arith.constant 1 : index
    %c0_12 = arith.constant 0 : index
    %c0_13 = arith.constant 0 : index
    %24 = vector.load %arg3[%c1_11, %c0_12, %c0_13] : memref<2x8x128xf32, #tpu.memory_space<vmem>>, vector<1x8x128xf32>
    %25 = vector.shape_cast %24 : vector<1x8x128xf32> to vector<8x128xf32>
    %26 = vector.shape_cast %23 : vector<8x128xf32> to vector<1x8x128xf32>
    tpu.vector_store %arg3[%c1_11, %c0_12, %c0_13], %26 {strides = array<i32>} : memref<2x8x128xf32, #tpu.memory_space<vmem>>, vector<1x8x128xf32>,
    return
  }
  func.func @transform_0(%arg0: i32) -> i32 {
    %c0_i32 = arith.constant 0 : i32
    %c0_i32_0 = arith.constant 0 : i32
    return %c0_i32 : i32
  }
  func.func @transform_1(%arg0: i32) -> (i32, i32, i32) {
    %c0_i32 = arith.constant 0 : i32
    %c0_i32_0 = arith.constant 0 : i32
    %c0_i32_1 = arith.constant 0 : i32
    return %c0_i32, %arg0, %c0_i32_0 : i32, i32, i32
  }
  func.func @transform_2(%arg0: i32) -> (i32, i32, i32) {
    %c0_i32 = arith.constant 0 : i32
    %c0_i32_0 = arith.constant 0 : i32
    %c0_i32_1 = arith.constant 0 : i32
    return %c0_i32, %arg0, %c0_i32_0 : i32, i32, i32
  }
}

</mosaic_0001>

<bundles_post_ra>
// kernel: torch_with_softmax_forward.1
= control target key start
LH: loop header
LB: loop body
LE: loop exit
PB: predicated region body
PF: predicated region fallthrough
CT: control target
= control target key end

     0   :  { %7 = vsyncpa [#allocation3], 0  ;;  %s101_s0 = inlined_call_operand.vmem [shape: f32[3], index: 0, kind: input, shape index: {}]   ;;  %s102_s1 = inlined_call_operand.vmem [shape: f32[2,8,128], index: 1, kind: input, shape index: {}]   ;;  %s103_s2 = inlined_call_operand.vmem [shape: f32[2,8,128], index: 2, kind: output, shape index: {}]  }
   0x1   :  { %s14_s11 = sshll.u32 %s101_s0, 4  ;;  %s15_s11 = int_to_ptr.vmem [resolvable:$true] %s14_s11 }
   0x2   :  { %s56_s12 = scalar_lea.vmem %s15_s11, 16  ;;  %p61_p1 = scmp.lt.s32.totalorder %s15_s11, %s15_s11 }
   0x3   :  { %p57_p0 = scmp.ne.s32.totalorder %s15_s11, %s56_s12  ;;  %p62_p2 = scmp.lt.s32.totalorder %s56_s12, %s56_s12 }
   0x5   :  { %p63_p3 = por %p62_p2, %p61_p1 }
   0x7   :  { %p64_p4 = pnand %p63_p3, %p57_p0 }
   0x9   :  { %67 = shalt.err (!%p64_p4)
}
   0xa   :  { %s70_s13 = smov [#allocation2]  }
   0xb   :  { %17 = dma.vmem_to_smem %s15_s11, 16, %s70_s13, [#allocation3]  }
   0xc   :  { %68 = dma.done.wait [#allocation3], 16  }
   0xd   :  { %69 = vsyncadd [#allocation3], 4294967280 }
   0xe   :  { %23 = sfence }
   0xf   :  { %s27_s14 = sld [smem:[#allocation2]]  ;;  %v24_v0 = vld [vmem:[%s102_s1] sm:$0xff]  ;;  %v49_v1 = vld [vmem:[%s102_s1 + $0x8] sm:$0xff] }
  0x10   :  { %s50_s15 = sld [smem:[#allocation2 + $0x1]] }
  0x11   :  { %s51_s16 = sld [smem:[#allocation2 + $0x2]] }
  0x15   :  { %v28_v2 = vstv %s27_s14 }
  0x16   :  { %v29_v3 = vmul.f32 %v28_v2, %v24_v0  ;;  %v31_v4 = vstv %s50_s15 }
  0x17   :  { %v32_v5 = vmul.f32 %v49_v1, %v31_v4  ;;  %v35_v6 = vstv %s51_s16 }
  0x19   :  { %v33_v7 = vadd.f32 %v32_v5, %v29_v3 }
  0x1b   :  { %v36_v8 = vadd.f32 %v35_v6, %v33_v7 }
  0x1d   :  { %54 = vtanh.f32 %v36_v8 }
  0x2a   :  { %v55_v9 = vpop.eup %54 }
  0x2b   :  { %v38_v10 = vmul.f32 0.5, %v55_v9 }
  0x2d   :  { %v39_v11 = vadd.f32 0.5, %v38_v10 }
  0x2f   :  { %40 = vst [vmem:[%s103_s2] sm:$0xff] %v39_v11  ;;  %v41_v12 = vsub.f32 1.0, %v39_v11 }
  0x31   :  { %52 = vst [vmem:[%s103_s2 + $0x8] sm:$0xff] %v41_v12 }
  0x32   :  { %48 = vsyncpa [#allocation3], 1 }

</bundles_post_ra>
